<compile_context>
chip_gen: v7x
topology: tpu7x:2x2x1
jax: 0.10.0
libtpu: 0.0.40
codegen_flags: <defaults>
</compile_context>

<pallas_src>
from functools import partial

import jax
import jax.numpy as jnp
from jax.experimental import pallas as pl
from jax.experimental.pallas import tpu as pltpu


def gcn_encoder_kernel(a_ref, dinv_ref, x_ref, w1_ref, b1_ref, w2_ref, b2_ref, z_ref):
    # A is int8 duplicate-edge counts of (A + I); upcast once for the MXU (exact for
    # small integer counts).  No O(N^2) normalization work: D^{-1/2} is applied to
    # the small (N, hidden) matrices instead.
    a = a_ref[...].astype(jnp.float32).astype(jnp.bfloat16)
    dinv = dinv_ref[...]                                      # (N_P, 1) f32

    # ----- layer 1: relu(A_hat @ (X @ W1) + b1),  A_hat@V = dinv*(A@(dinv*V)) -----
    xw1 = jnp.dot(x_ref[...], w1_ref[...], preferred_element_type=jnp.float32)
    v1 = (dinv * xw1).astype(jnp.bfloat16)
    h1 = dinv * jnp.dot(a, v1, preferred_element_type=jnp.float32) + b1_ref[...]
    h1 = jnp.maximum(h1, 0.0)

    # ----- layer 2: A_hat @ (H1 @ W2) + b2 -----
    hw2 = jnp.dot(h1.astype(jnp.bfloat16), w2_ref[...],
                  preferred_element_type=jnp.float32)
    v2 = (dinv * hw2).astype(jnp.bfloat16)
    z_ref[...] = dinv * jnp.dot(a, v2, preferred_element_type=jnp.float32) + b2_ref[...]


def _round_up(v, m):
    return ((v + m - 1) // m) * m


def _pad_to(arr, shape):
    pads = [(0, t - s) for s, t in zip(arr.shape, shape)]
    return jnp.pad(arr, pads)


def build_graph(edge_index, num_nodes):
    """One-time graph setup.

    Returns:
      a_p:      (N_P, N_P) int8, pre-padded (A + I) duplicate-edge counts.
      dinv_col: (N_P, 1)  f32, pre-padded deg^{-1/2} column (0 on padded rows).
      a_counts: (N, N)    f32 counts   -- for the pure-JAX references only.
      dinv:     (N,)      f32          -- for the pure-JAX references only.
    """
    n_p = _round_up(num_nodes, 128)
    src = edge_index[0]
    dst = edge_index[1]
    loop = jnp.arange(num_nodes, dtype=edge_index.dtype)
    src = jnp.concatenate([src, loop])
    dst = jnp.concatenate([dst, loop])
    counts = jnp.zeros((n_p, n_p), jnp.int32).at[dst, src].add(1)
    # int8 storage is exact only for duplicate-edge counts <= 127.
    assert int(jnp.max(counts)) <= 127, "multi-edge count overflows int8 storage"
    a_p = counts.astype(jnp.int8)
    deg = jnp.sum(counts, axis=1).astype(jnp.float32)
    dinv = jnp.where(deg > 0.0, jax.lax.rsqrt(deg), 0.0)
    return (a_p, dinv[:, None],
            counts[:num_nodes, :num_nodes].astype(jnp.float32), dinv[:num_nodes])


def prepare_params(w1, b1, w2, b2):
    """One-time parameter setup: pad to (8,128)-aligned tiles, cast weights to bf16."""
    f_p = _round_up(w1.shape[0], 128)
    h_p = _round_up(w1.shape[1], 128)
    o_p = _round_up(w2.shape[1], 128)
    return (
        _pad_to(w1, (f_p, h_p)).astype(jnp.bfloat16),
        _pad_to(b1.reshape(1, -1), (1, h_p)).astype(jnp.float32),
        _pad_to(w2, (h_p, o_p)).astype(jnp.bfloat16),
        _pad_to(b2.reshape(1, -1), (1, o_p)).astype(jnp.float32),
    )


@partial(jax.jit, static_argnames=("out_c",))
def gcn_encoder(a_p, dinv_col, x, w1_p, b1_p, w2_p, b2_p, *, out_c):
    n, _ = x.shape
    n_p = a_p.shape[0]
    f_p, h_p = w1_p.shape
    o_p = w2_p.shape[1]

    # Only the per-call input X is padded per forward; everything else is pre-padded.
    # Zero padding is mathematically free: zero rows/cols of A/X/W contribute nothing
    # to the real [:n, :out_c] block.
    x_p = _pad_to(x, (n_p, f_p)).astype(jnp.bfloat16)

    # Scoped-VMEM budget from the actual resident buffers + in-kernel intermediates,
    # capped below v7x's 64 MiB physical VMEM (and above v5e's 16 MiB default).
    resident = (
        n_p * n_p * (1 + 2)                 # int8 A input + in-kernel bf16 copy
        + n_p * 4                           # dinv column
        + n_p * f_p * 2                     # X (bf16)
        + (f_p * h_p + h_p * o_p) * 2       # W1, W2 (bf16)
        + (h_p + o_p) * 4                   # b1, b2 (f32)
        + n_p * (h_p * 3 + o_p * 2) * 4     # xw1/v1/h1 and hw2/v2 intermediates
        + n_p * o_p * 4                     # output slab
    )
    vmem_limit = int(min(max(2 * resident, 8 * 1024 * 1024), 48 * 1024 * 1024))

    vmem = pl.BlockSpec(memory_space=pltpu.MemorySpace.VMEM)
    z_p = pl.pallas_call(
        gcn_encoder_kernel,
        out_shape=jax.ShapeDtypeStruct((n_p, o_p), jnp.float32),
        in_specs=[vmem] * 7,
        out_specs=vmem,
        compiler_params=pltpu.CompilerParams(vmem_limit_bytes=vmem_limit),
    )(a_p, dinv_col, x_p, w1_p, b1_p, w2_p, b2_p)

    # Lane-dense padded output slab; the real [N, OUT_C] block fuses under jit.
    return z_p[:n, :out_c]


def reference_forward_matched(a_counts, dinv, x, w1, b1, w2, b2):
    """Same bf16-operand / f32-accumulation path as the kernel (tight check)."""
    a = a_counts.astype(jnp.bfloat16)
    d = dinv[:, None]
    xw1 = jnp.dot(x.astype(jnp.bfloat16), w1.astype(jnp.bfloat16),
                  preferred_element_type=jnp.float32)
    h1 = jnp.maximum(
        d * jnp.dot(a, (d * xw1).astype(jnp.bfloat16),
                    preferred_element_type=jnp.float32) + b1, 0.0)
    hw2 = jnp.dot(h1.astype(jnp.bfloat16), w2.astype(jnp.bfloat16),
                  preferred_element_type=jnp.float32)
    return d * jnp.dot(a, (d * hw2).astype(jnp.bfloat16),
                       preferred_element_type=jnp.float32) + b2


def reference_forward_f32(a_counts, dinv, x, w1, b1, w2, b2):
    """Full-precision semantic reference (loose check; bf16 quantization expected)."""
    a_hat = (dinv[:, None] * a_counts) * dinv[None, :]
    h1 = jnp.maximum(a_hat @ (x @ w1) + b1, 0.0)
    return a_hat @ (h1 @ w2) + b2


if __name__ == "__main__":
    # Shapes implied by the module: 100 nodes, 16 input features, 2*num_nodes edges.
    N, F_IN, OUT_C = 100, 16, 8
    HID = 2 * OUT_C

    key = jax.random.PRNGKey(0)
    k_x, k_e, k_w1, k_b1, k_w2, k_b2 = jax.random.split(key, 6)

    x = jax.random.uniform(k_x, (N, F_IN), dtype=jnp.float32)
    edge_index = jax.random.randint(k_e, (2, 2 * N), 0, N, dtype=jnp.int32)

    # Deterministic synthetic parameters (glorot-ish scaling).
    w1 = jax.random.normal(k_w1, (F_IN, HID), jnp.float32) / jnp.sqrt(float(F_IN))
    b1 = jax.random.normal(k_b1, (1, HID), jnp.float32) * 0.01
    w2 = jax.random.normal(k_w2, (HID, OUT_C), jnp.float32) / jnp.sqrt(float(HID))
    b2 = jax.random.normal(k_b2, (1, OUT_C), jnp.float32) * 0.01

    # One-time graph + parameter setup (padding / casting happens once, not per call).
    a_p, dinv_col, a_counts, dinv = build_graph(edge_index, N)
    w1_p, b1_p, w2_p, b2_p = prepare_params(w1, b1, w2, b2)

    z = gcn_encoder(a_p, dinv_col, x, w1_p, b1_p, w2_p, b2_p, out_c=OUT_C)
    jax.block_until_ready(z)
    assert z.shape == (N, OUT_C)

    z_matched = reference_forward_matched(a_counts, dinv, x, w1, b1, w2, b2)
    z_f32 = reference_forward_f32(a_counts, dinv, x, w1, b1, w2, b2)
    assert jnp.allclose(z, z_matched, atol=1e-2, rtol=1e-2), "mismatch vs matched bf16 reference"
    assert jnp.allclose(z, z_f32, atol=1e-1, rtol=1e-1), "mismatch vs f32 reference"

    print("KERNEL_OK")
</pallas_src>

<mosaic_0001>
module attributes {stable_mosaic.version = 11 : i64} {
  func.func @gcn_encoder_kernel(%arg0: memref<128x128xi8, #tpu.memory_space<vmem>>, %arg1: memref<128x1xf32, #tpu.memory_space<vmem>>, %arg2: memref<128x128xbf16, #tpu.memory_space<vmem>>, %arg3: memref<128x128xbf16, #tpu.memory_space<vmem>>, %arg4: memref<1x128xf32, #tpu.memory_space<vmem>>, %arg5: memref<128x128xbf16, #tpu.memory_space<vmem>>, %arg6: memref<1x128xf32, #tpu.memory_space<vmem>>, %arg7: memref<128x128xf32, #tpu.memory_space<vmem>>) attributes {dimension_semantics = [], scalar_prefetch = 0 : i64, scratch_operands = 0 : i64, tpu.core_type = #tpu.core_type<tc>} {
    %c0 = arith.constant 0 : index
    %c0_0 = arith.constant 0 : index
    %0 = vector.load %arg0[%c0, %c0_0] : memref<128x128xi8, #tpu.memory_space<vmem>>, vector<128x128xi8>
    %1 = arith.sitofp %0 : vector<128x128xi8> to vector<128x128xf32>
    %2 = arith.truncf %1 : vector<128x128xf32> to vector<128x128xbf16>
    %c0_1 = arith.constant 0 : index
    %c0_2 = arith.constant 0 : index
    %3 = vector.load %arg1[%c0_1, %c0_2] : memref<128x1xf32, #tpu.memory_space<vmem>>, vector<128x1xf32>
    %c0_3 = arith.constant 0 : index
    %c0_4 = arith.constant 0 : index
    %4 = vector.load %arg2[%c0_3, %c0_4] : memref<128x128xbf16, #tpu.memory_space<vmem>>, vector<128x128xbf16>
    %c0_5 = arith.constant 0 : index
    %c0_6 = arith.constant 0 : index
    %5 = vector.load %arg3[%c0_5, %c0_6] : memref<128x128xbf16, #tpu.memory_space<vmem>>, vector<128x128xbf16>
    %cst = arith.constant dense<0.000000e+00> : vector<128x128xf32>
    %6 = tpu.matmul %4, %5, %cst {dimension_numbers = #tpu.dot_dimension_numbers<[1], [0], [0], [1], [0, 0, 1, 1], [], []>} : vector<128x128xbf16>, vector<128x128xbf16>, vector<128x128xf32> -> vector<128x128xf32>
    %7 = vector.broadcast %3 : vector<128x1xf32> to vector<128x128xf32>
    %8 = arith.mulf %7, %6 : vector<128x128xf32>
    %9 = arith.truncf %8 : vector<128x128xf32> to vector<128x128xbf16>
    %cst_7 = arith.constant dense<0.000000e+00> : vector<128x128xf32>
    %10 = tpu.matmul %2, %9, %cst_7 {dimension_numbers = #tpu.dot_dimension_numbers<[1], [0], [0], [1], [0, 0, 1, 1], [], []>} : vector<128x128xbf16>, vector<128x128xbf16>, vector<128x128xf32> -> vector<128x128xf32>
    %11 = vector.broadcast %3 : vector<128x1xf32> to vector<128x128xf32>
    %12 = arith.mulf %11, %10 : vector<128x128xf32>
    %c0_8 = arith.constant 0 : index
    %c0_9 = arith.constant 0 : index
    %13 = vector.load %arg4[%c0_8, %c0_9] : memref<1x128xf32, #tpu.memory_space<vmem>>, vector<1x128xf32>
    %14 = vector.broadcast %13 : vector<1x128xf32> to vector<128x128xf32>
    %15 = arith.addf %12, %14 : vector<128x128xf32>
    %cst_10 = arith.constant 0.000000e+00 : f32
    %16 = vector.broadcast %cst_10 : f32 to vector<128x128xf32>
    %17 = arith.maximumf %15, %16 : vector<128x128xf32>
    %18 = arith.truncf %17 : vector<128x128xf32> to vector<128x128xbf16>
    %c0_11 = arith.constant 0 : index
    %c0_12 = arith.constant 0 : index
    %19 = vector.load %arg5[%c0_11, %c0_12] : memref<128x128xbf16, #tpu.memory_space<vmem>>, vector<128x128xbf16>
    %cst_13 = arith.constant dense<0.000000e+00> : vector<128x128xf32>
    %20 = tpu.matmul %18, %19, %cst_13 {dimension_numbers = #tpu.dot_dimension_numbers<[1], [0], [0], [1], [0, 0, 1, 1], [], []>} : vector<128x128xbf16>, vector<128x128xbf16>, vector<128x128xf32> -> vector<128x128xf32>
    %21 = vector.broadcast %3 : vector<128x1xf32> to vector<128x128xf32>
    %22 = arith.mulf %21, %20 : vector<128x128xf32>
    %23 = arith.truncf %22 : vector<128x128xf32> to vector<128x128xbf16>
    %cst_14 = arith.constant dense<0.000000e+00> : vector<128x128xf32>
    %24 = tpu.matmul %2, %23, %cst_14 {dimension_numbers = #tpu.dot_dimension_numbers<[1], [0], [0], [1], [0, 0, 1, 1], [], []>} : vector<128x128xbf16>, vector<128x128xbf16>, vector<128x128xf32> -> vector<128x128xf32>
    %25 = vector.broadcast %3 : vector<128x1xf32> to vector<128x128xf32>
    %26 = arith.mulf %25, %24 : vector<128x128xf32>
    %c0_15 = arith.constant 0 : index
    %c0_16 = arith.constant 0 : index
    %27 = vector.load %arg6[%c0_15, %c0_16] : memref<1x128xf32, #tpu.memory_space<vmem>>, vector<1x128xf32>
    %28 = vector.broadcast %27 : vector<1x128xf32> to vector<128x128xf32>
    %29 = arith.addf %26, %28 : vector<128x128xf32>
    %c0_17 = arith.constant 0 : index
    %c0_18 = arith.constant 0 : index
    %30 = vector.load %arg7[%c0_17, %c0_18] : memref<128x128xf32, #tpu.memory_space<vmem>>, vector<128x128xf32>
    tpu.vector_store %arg7[%c0_17, %c0_18], %29 {strides = array<i32>} : memref<128x128xf32, #tpu.memory_space<vmem>>, vector<128x128xf32>,
    return
  }
}

</mosaic_0001>

<bundles_post_ra>
// kernel: gcn_encoder.1
= control target key start
LH: loop header
LB: loop body
LE: loop exit
PB: predicated region body
PF: predicated region fallthrough
CT: control target
= control target key end

     0   :  { %v1130_v1 = vmov 0   ;;  %s1519_s3 = inlined_call_operand.vmem [shape: bf16[128,128], index: 3, kind: input, shape index: {}]   ;;  %s1520_s2 = inlined_call_operand.vmem [shape: bf16[128,128], index: 2, kind: input, shape index: {}]   ;;  %s1521_s1 = inlined_call_operand.vmem [shape: f32[128,1], index: 1, kind: input, shape index: {}]   ;;  %s1522_s0 = inlined_call_operand.vmem [shape: s8[128,128], index: 0, kind: input, shape index: {}]   ;;  %s1523_s5 = inlined_call_operand.vmem [shape: bf16[128,128], index: 5, kind: input, shape index: {}]   ;;  %s1524_s4 = inlined_call_operand.vmem [shape: f32[1,128], index: 4, kind: input, shape index: {}]   ;;  %s1525_s6 = inlined_call_operand.vmem [shape: f32[1,128], index: 6, kind: input, shape index: {}]   ;;  %s1526_s7 = inlined_call_operand.vmem [shape: f32[128,128], index: 7, kind: output, shape index: {}]  }
   0x1   :  { %v1106_v0 = vld [vmem:[%s1519_s3] sm:$0xff]   ;;  %1104 = vset.pattern.permute.xlu0 %v1130_v1  ;;  %1105 = vset.pattern.permute.xlu1 %v1130_v1  ;;  %v1107_v2 = vld [vmem:[%s1519_s3 + $0x8] sm:$0xff]   ;;  %v1108_v3 = vld [vmem:[%s1519_s3 + $0x10] sm:$0xff]  }
   0x2   :  { %975 = vmatprep.subr.bf16.mxu0 %v1106_v0  ;;  %v1109_v4 = vld [vmem:[%s1519_s3 + $0x18] sm:$0xff]   ;;  %v1114_v5 = vld [vmem:[%s1520_s2] sm:$0xff]   ;;  %v1111_v7 = vld [vmem:[%s1519_s3 + $0x28] sm:$0xff]  }
   0x3   :  { %976 = vmatpush3.bf16.msra.mxu0 %v1106_v0  ;;  %991 = vmatprep.mubr.bf16.mxu0 %v1114_v5  ;;  %v1110_v6 = vld [vmem:[%s1519_s3 + $0x20] sm:$0xff]   ;;  %v41_v9 = vld [vmem:[%s1521_s1 + $0x10] sm:$0xff]  ;;  %v40_v10 = vld [vmem:[%s1521_s1 + $0x8] sm:$0xff] }
   0x4   :  { %977 = vmatprep.subr.bf16.mxu0 %v1107_v2  ;;  %v39_v8 = vld [vmem:[%s1521_s1] sm:$0xff]  ;;  %292 = vperm.xlu1 %1105, %v41_v9   ;;  %v42_v11 = vld [vmem:[%s1521_s1 + $0x18] sm:$0xff]  ;;  %v1112_v12 = vld [vmem:[%s1519_s3 + $0x30] sm:$0xff]  }
   0x5   :  { %282 = vperm.xlu0 %1104, %v39_v8   ;;  %v43_v13 = vld [vmem:[%s1521_s1 + $0x20] sm:$0xff]  ;;  %v44_v14 = vld [vmem:[%s1521_s1 + $0x28] sm:$0xff]  ;;  %v1113_v15 = vld [vmem:[%s1519_s3 + $0x38] sm:$0xff]  }
   0x6   :  { %v45_v16 = vld [vmem:[%s1521_s1 + $0x30] sm:$0xff]  ;;  %v46_v17 = vld [vmem:[%s1521_s1 + $0x38] sm:$0xff]  ;;  %v1115_v18 = vld [vmem:[%s1520_s2 + $0x8] sm:$0xff]  }
   0x7   :  { %978 = vmatpush3.bf16.msra.mxu0 %v1107_v2  ;;  %v47_v19 = vld [vmem:[%s1521_s1 + $0x40] sm:$0xff]  ;;  %v48_v20 = vld [vmem:[%s1521_s1 + $0x48] sm:$0xff]  ;;  %v1116_v21 = vld [vmem:[%s1520_s2 + $0x10] sm:$0xff]  }
   0x8   :  { %979 = vmatprep.subr.bf16.mxu0 %v1108_v3  ;;  %297 = vperm.xlu1 %1105, %v42_v11   ;;  %v49_v22 = vld [vmem:[%s1521_s1 + $0x50] sm:$0xff]  ;;  %v50_v23 = vld [vmem:[%s1521_s1 + $0x58] sm:$0xff]  ;;  %v51_v25 = vld [vmem:[%s1521_s1 + $0x60] sm:$0xff] }
   0x9   :  { %287 = vperm.xlu0 %1104, %v40_v10   ;;  %v1117_v24 = vld [vmem:[%s1520_s2 + $0x18] sm:$0xff]   ;;  %v52_v26 = vld [vmem:[%s1521_s1 + $0x68] sm:$0xff]  ;;  %v1118_v27 = vld [vmem:[%s1520_s2 + $0x20] sm:$0xff]  }
   0xa   :  { %v53_v28 = vld [vmem:[%s1521_s1 + $0x70] sm:$0xff]  ;;  %v54_v29 = vld [vmem:[%s1521_s1 + $0x78] sm:$0xff]  ;;  %v1119_v30 = vld [vmem:[%s1520_s2 + $0x28] sm:$0xff]  }
   0xb   :  { %980 = vmatpush3.bf16.msra.mxu0 %v1108_v3  ;;  %v1120_v31 = vld [vmem:[%s1520_s2 + $0x30] sm:$0xff]   ;;  %v1121_v32 = vld [vmem:[%s1520_s2 + $0x38] sm:$0xff]   ;;  %v1270_v33 = vld [vmem:[%s1522_s0] sm:$0xff] }
   0xc   :  { %981 = vmatprep.subr.bf16.mxu0 %v1109_v4  ;;  %307 = vperm.xlu1 %1105, %v44_v14   ;;  %v31_v34 = vunpack.c.l.s8.bf16 %v1270_v33  ;;  %v1122_v35 = vld [vmem:[%s1523_s5] sm:$0xff]   ;;  %v1123_v36 = vld [vmem:[%s1523_s5 + $0x8] sm:$0xff]   ;;  %v1124_v37 = vld [vmem:[%s1523_s5 + $0x10] sm:$0xff]  }
   0xd   :  { %302 = vperm.xlu0 %1104, %v43_v13   ;;  %v1125_v38 = vld [vmem:[%s1523_s5 + $0x18] sm:$0xff]   ;;  %v1126_v39 = vld [vmem:[%s1523_s5 + $0x20] sm:$0xff]  }
   0xe   :  { %1023 = vmatprep.mubr.bf16.mxu1 %v31_v34 }
   0xf   :  { %982 = vmatpush3.bf16.msra.mxu0 %v1109_v4 }
  0x10   :  { %983 = vmatprep.subr.bf16.mxu0 %v1110_v6  ;;  %317 = vperm.xlu1 %1105, %v46_v17  }
  0x11   :  { %312 = vperm.xlu0 %1104, %v45_v16  }
  0x13   :  { %984 = vmatpush3.bf16.msra.mxu0 %v1110_v6 }
  0x14   :  { %985 = vmatprep.subr.bf16.mxu0 %v1111_v7  ;;  %327 = vperm.xlu1 %1105, %v48_v20  }
  0x15   :  { %322 = vperm.xlu0 %1104, %v47_v19  }
  0x17   :  { %986 = vmatpush3.bf16.msra.mxu0 %v1111_v7 }
  0x18   :  { %987 = vmatprep.subr.bf16.mxu0 %v1112_v12  ;;  %337 = vperm.xlu1 %1105, %v50_v23  }
  0x19   :  { %332 = vperm.xlu0 %1104, %v49_v22  }
  0x1b   :  { %988 = vmatpush3.bf16.msra.mxu0 %v1112_v12 }
  0x1c   :  { %989 = vmatprep.subr.bf16.mxu0 %v1113_v15  ;;  %347 = vperm.xlu1 %1105, %v52_v26  }
  0x1d   :  { %342 = vperm.xlu0 %1104, %v51_v25  }
  0x1f   :  { %990 = vmatpush3.bf16.msra.mxu0 %v1113_v15 }
  0x20   :  { %357 = vperm.xlu1 %1105, %v54_v29   ;;  %1039 = vmatprep.subr.bf16.mxu0 %v1122_v35 }
  0x21   :  { %352 = vperm.xlu0 %1104, %v53_v28  }
  0x22   :  { %992 = vmatmul.mubr.bf16.vlgmr.msra.gmra.mrb[0].mxu0 %v1115_v18 }
  0x23   :  { %995 = vmatprep.mubr.bf16.mxu0 %v1116_v21  ;;  %1040 = vmatpush3.bf16.msra.mxu0 %v1122_v35  ;;  %v32_v35 = vunpack.c.h.s8.bf16 %v1270_v33 }
  0x24   :  { %1041 = vmatprep.subr.bf16.mxu0 %v1123_v36 }
  0x27   :  { %1042 = vmatpush3.bf16.msra.mxu0 %v1123_v36 }
  0x28   :  { %1043 = vmatprep.subr.bf16.mxu0 %v1124_v37 }
  0x2a   :  { %996 = vmatmul.mubr.bf16.gmra.mrb[4].mxu0 %v1117_v24 }
  0x2b   :  { %999 = vmatprep.mubr.bf16.mxu0 %v1118_v27  ;;  %1044 = vmatpush3.bf16.msra.mxu0 %v1124_v37  ;;  %v1352_v37 = vld [vmem:[%s1522_s0 + $0x10] sm:$0xff] }
  0x2c   :  { %1045 = vmatprep.subr.bf16.mxu0 %v1125_v38 }
  0x2f   :  { %1046 = vmatpush3.bf16.msra.mxu0 %v1125_v38 }
  0x30   :  { %1047 = vmatprep.subr.bf16.mxu0 %v1126_v39 }
  0x32   :  { %1000 = vmatmul.mubr.bf16.gmra.mrb[8].mxu0 %v1119_v30 }
  0x33   :  { %1003 = vmatprep.mubr.bf16.mxu0 %v1120_v31  ;;  %1048 = vmatpush3.bf16.msra.mxu0 %v1126_v39  ;;  %v35_v39 = vunpack.c.l.s8.bf16 %v1352_v37 }
  0x3a   :  { %1004 = vmatmul.mubr.bf16.gmra.mrb[12].mxu0 %v1121_v32  ;;  %v1341_v32 = vld [vmem:[%s1522_s0 + $0x8] sm:$0xff] }
  0x3b   :  { %v33_v36 = vunpack.c.l.s8.bf16 %v1341_v32  ;;  %v34_v38 = vunpack.c.h.s8.bf16 %v1341_v32 }
  0x83   :  { %v1292_v41 = vpop.permute.xlu1 %292 }
  0x84   :  { %v1290_v40 = vpop.permute.xlu0 %282 }
  0x87   :  { %v1296_v43 = vpop.permute.xlu1 %297 }
  0x88   :  { %v1294_v42 = vpop.permute.xlu0 %287 }
  0x8b   :  { %v1300_v45 = vpop.permute.xlu1 %307 }
  0x8c   :  { %v1298_v44 = vpop.permute.xlu0 %302 }
  0x8f   :  { %v1304_v49 = vpop.permute.xlu1 %317 }
  0x90   :  { %v1302_v47 = vpop.permute.xlu0 %312 }
  0x93   :  { %v1312_v59 = vpop.permute.xlu1 %327 }
  0x94   :  { %v1310_v58 = vpop.permute.xlu0 %322 }
  0x97   :  { %v1320_v6 = vpop.permute.xlu1 %337 }
  0x98   :  { %v1318_v4 = vpop.permute.xlu0 %332 }
  0x9b   :  { %v1326_v15 = vpop.permute.xlu1 %347 }
  0x9c   :  { %v1322_v11 = vpop.permute.xlu0 %342 }
  0x9f   :  { %v1332_v23 = vpop.permute.xlu1 %357 }
  0xa0   :  { %v1330_v21 = vpop.permute.xlu0 %352 }
  0xf5   :  { %v993_v46 = vpop.f32.mrb[0].mxu0 }
  0xf6   :  { %v217_v48 = vpop.f32.mrb[1].mxu0  ;;  %v362_v51 = vmul.f32 %v993_v46, %v1292_v41  ;;  %v1363_v46 = vld [vmem:[%s1522_s0 + $0x18] sm:$0xff] }
  0xf7   :  { %v994_v50 = vpop.f32.mrb[2].mxu0  ;;  %v360_v54 = vmul.f32 %v1290_v40, %v217_v48  ;;  %v36_v48 = vunpack.c.h.s8.bf16 %v1352_v37 }
  0xf8   :  { %v363_v52 = vmul.f32 %v994_v50, %v1296_v43  ;;  %v220_v53 = vpop.f32.mrb[3].mxu0  ;;  %v37_v50 = vunpack.c.l.s8.bf16 %v1363_v46 }
  0xf9   :  { %v361_v55 = vmul.f32 %v1294_v42, %v220_v53  ;;  %v1128_v53 = vld [vmem:[%s1523_s5 + $0x30] sm:$0xff]  }
  0xfa   :  { %v377_v56 = vpack.c.bf16 %v363_v52, %v362_v51  ;;  %v38_v51 = vunpack.c.h.s8.bf16 %v1363_v46  ;;  %v1127_v52 = vld [vmem:[%s1523_s5 + $0x28] sm:$0xff]  }
  0xfb   :  { %v376_v57 = vpack.c.bf16 %v361_v55, %v360_v54  ;;  %1049 = vmatprep.subr.bf16.mxu0 %v1127_v52  ;;  %v1129_v54 = vld [vmem:[%s1523_s5 + $0x38] sm:$0xff]  }
  0xfc   :  { %1050 = vmatpush3.bf16.msra.mxu0 %v1127_v52 }
  0xfd   :  { %v997_v60 = vpop.f32.mrb[4].mxu0  ;;  %1007 = vmatprep.subr.bf16.mxu1 %v376_v57  ;;  %1051 = vmatprep.subr.bf16.mxu0 %v1128_v53 }
  0xfe   :  { %v233_v61 = vpop.f32.mrb[5].mxu0  ;;  %1008 = vmatpush3.bf16.msra.mxu1 %v376_v57  ;;  %v366_v63 = vmul.f32 %v997_v60, %v1302_v47 }
  0xff   :  { %v998_v62 = vpop.f32.mrb[6].mxu0  ;;  %1009 = vmatprep.subr.bf16.mxu1 %v377_v56  ;;  %v364_v2 = vmul.f32 %v1298_v44, %v233_v61 }
 0x100   :  { %v367_v0 = vmul.f32 %v998_v62, %v1304_v49  ;;  %v236_v1 = vpop.f32.mrb[7].mxu0  ;;  %1052 = vmatpush3.bf16.msra.mxu0 %v1128_v53 }
 0x101   :  { %v365_v3 = vmul.f32 %v1300_v45, %v236_v1  ;;  %1053 = vmatprep.subr.bf16.mxu0 %v1129_v54 }
 0x102   :  { %v379_v5 = vpack.c.bf16 %v367_v0, %v366_v63  ;;  %1010 = vmatpush3.bf16.msra.mxu1 %v377_v56 }
 0x103   :  { %v378_v7 = vpack.c.bf16 %v365_v3, %v364_v2 }
 0x104   :  { %1054 = vmatpush3.bf16.msra.mxu0 %v1129_v54 }
 0x105   :  { %v1001_v8 = vpop.f32.mrb[8].mxu0  ;;  %1011 = vmatprep.subr.bf16.mxu1 %v378_v7 }
 0x106   :  { %v249_v9 = vpop.f32.mrb[9].mxu0  ;;  %1012 = vmatpush3.bf16.msra.mxu1 %v378_v7  ;;  %v370_v12 = vmul.f32 %v1001_v8, %v1318_v4 }
 0x107   :  { %v1002_v10 = vpop.f32.mrb[10].mxu0  ;;  %1013 = vmatprep.subr.bf16.mxu1 %v379_v5  ;;  %v368_v16 = vmul.f32 %v1310_v58, %v249_v9 }
 0x108   :  { %v371_v13 = vmul.f32 %v1002_v10, %v1320_v6  ;;  %v252_v14 = vpop.f32.mrb[11].mxu0 }
 0x109   :  { %v369_v17 = vmul.f32 %v1312_v59, %v252_v14 }
 0x10a   :  { %v381_v18 = vpack.c.bf16 %v371_v13, %v370_v12  ;;  %1014 = vmatpush3.bf16.msra.mxu1 %v379_v5 }
 0x10b   :  { %v380_v19 = vpack.c.bf16 %v369_v17, %v368_v16 }
 0x10d   :  { %v1005_v20 = vpop.f32.mrb[12].mxu0  ;;  %1015 = vmatprep.subr.bf16.mxu1 %v380_v19 }
 0x10e   :  { %v265_v22 = vpop.f32.mrb[13].mxu0  ;;  %1016 = vmatpush3.bf16.msra.mxu1 %v380_v19  ;;  %v374_v25 = vmul.f32 %v1005_v20, %v1330_v21 }
 0x10f   :  { %v1006_v24 = vpop.f32.mrb[14].mxu0  ;;  %1017 = vmatprep.subr.bf16.mxu1 %v381_v18  ;;  %v372_v28 = vmul.f32 %v1322_v11, %v265_v22 }
 0x110   :  { %v375_v26 = vmul.f32 %v1006_v24, %v1332_v23  ;;  %v268_v27 = vpop.f32.mrb[15].mxu0 }
 0x111   :  { %v373_v29 = vmul.f32 %v1326_v15, %v268_v27 }
 0x112   :  { %v383_v30 = vpack.c.bf16 %v375_v26, %v374_v25  ;;  %1018 = vmatpush3.bf16.msra.mxu1 %v381_v18 }
 0x113   :  { %v382_v31 = vpack.c.bf16 %v373_v29, %v372_v28 }
 0x115   :  { %1019 = vmatprep.subr.bf16.mxu1 %v382_v31 }
 0x116   :  { %1020 = vmatpush3.bf16.msra.mxu1 %v382_v31 }
 0x117   :  { %1021 = vmatprep.subr.bf16.mxu1 %v383_v30 }
 0x11a   :  { %1022 = vmatpush3.bf16.msra.mxu1 %v383_v30 }
 0x11d   :  { %1024 = vmatmul.mubr.bf16.vlgmr.msra.gmra.mrb[0].mxu1 %v32_v35 }
 0x11e   :  { %1027 = vmatprep.mubr.bf16.mxu1 %v33_v36 }
 0x125   :  { %1028 = vmatmul.mubr.bf16.gmra.mrb[4].mxu1 %v34_v38 }
 0x126   :  { %1031 = vmatprep.mubr.bf16.mxu1 %v35_v39 }
 0x12d   :  { %1032 = vmatmul.mubr.bf16.gmra.mrb[8].mxu1 %v36_v48 }
 0x12e   :  { %1035 = vmatprep.mubr.bf16.mxu1 %v37_v50 }
 0x135   :  { %1036 = vmatmul.mubr.bf16.gmra.mrb[12].mxu1 %v38_v51 }
 0x136   :  { %1087 = vmatprep.mubr.bf16.mxu1 %v31_v34  ;;  %v1388_v34 = vld [vmem:[%s1524_s4] ss:$0 sm:$0xff] }
 0x1f0   :  { %v1025_v55 = vpop.f32.mrb[0].mxu1 }
 0x1f1   :  { %v483_v56 = vmul.f32 %v1025_v55, %v1292_v41  ;;  %v418_v57 = vpop.f32.mrb[1].mxu1 }
 0x1f2   :  { %v481_v60 = vmul.f32 %v418_v57, %v1290_v40  ;;  %v1026_v61 = vpop.f32.mrb[2].mxu1 }
 0x1f3   :  { %v506_v62 = vadd.f32 %v1388_v34, %v483_v56  ;;  %v484_v63 = vmul.f32 %v1026_v61, %v1296_v43  ;;  %v421_v0 = vpop.f32.mrb[3].mxu1 }
 0x1f4   :  { %v504_v1 = vadd.f32 %v1388_v34, %v481_v60  ;;  %v482_v2 = vmul.f32 %v421_v0, %v1294_v42 }
 0x1f5   :  { %v507_v3 = vadd.f32 %v1388_v34, %v484_v63  ;;  %v522_v7 = vmax.f32 %v506_v62, 0.0 }
 0x1f6   :  { %v505_v5 = vadd.f32 %v1388_v34, %v482_v2  ;;  %v520_v9 = vmax.f32 %v504_v1, 0.0 }
 0x1f7   :  { %v523_v8 = vmax.f32 %v507_v3, 0.0 }
 0x1f8   :  { %v521_v10 = vmax.f32 %v505_v5, 0.0  ;;  %v1029_v12 = vpop.f32.mrb[4].mxu1 }
 0x1f9   :  { %v537_v13 = vpack.c.bf16 %v523_v8, %v522_v7  ;;  %v487_v14 = vmul.f32 %v1029_v12, %v1302_v47  ;;  %v434_v16 = vpop.f32.mrb[5].mxu1 }
 0x1fa   :  { %v485_v17 = vmul.f32 %v434_v16, %v1298_v44  ;;  %v1030_v18 = vpop.f32.mrb[6].mxu1  ;;  %v536_v19 = vpack.c.bf16 %v521_v10, %v520_v9 }
 0x1fb   :  { %v510_v20 = vadd.f32 %v1388_v34, %v487_v14  ;;  %v488_v22 = vmul.f32 %v1030_v18, %v1304_v49  ;;  %v437_v24 = vpop.f32.mrb[7].mxu1 }
 0x1fc   :  { %v508_v25 = vadd.f32 %v1388_v34, %v485_v17  ;;  %v486_v26 = vmul.f32 %v437_v24, %v1300_v45  ;;  %1055 = vmatprep.mubr.bf16.mxu0 %v536_v19 }
 0x1fd   :  { %v511_v27 = vadd.f32 %v1388_v34, %v488_v22  ;;  %1056 = vmatmul.mubr.bf16.vlgmr.msra.gmra.mrb[16].mxu0 %v537_v13  ;;  %v526_v29 = vmax.f32 %v510_v20, 0.0 }
 0x1fe   :  { %v509_v28 = vadd.f32 %v1388_v34, %v486_v26  ;;  %v524_v31 = vmax.f32 %v508_v25, 0.0 }
 0x1ff   :  { %v527_v30 = vmax.f32 %v511_v27, 0.0 }
 0x200   :  { %v525_v52 = vmax.f32 %v509_v28, 0.0  ;;  %v1033_v53 = vpop.f32.mrb[8].mxu1 }
 0x201   :  { %v491_v54 = vmul.f32 %v1033_v53, %v1318_v4  ;;  %v450_v55 = vpop.f32.mrb[9].mxu1  ;;  %v539_v56 = vpack.c.bf16 %v527_v30, %v526_v29 }
 0x202   :  { %v489_v57 = vmul.f32 %v450_v55, %v1310_v58  ;;  %v1034_v60 = vpop.f32.mrb[10].mxu1  ;;  %v538_v61 = vpack.c.bf16 %v525_v52, %v524_v31 }
 0x203   :  { %v514_v62 = vadd.f32 %v1388_v34, %v491_v54  ;;  %v492_v63 = vmul.f32 %v1034_v60, %v1320_v6  ;;  %v453_v0 = vpop.f32.mrb[11].mxu1 }
 0x204   :  { %v512_v1 = vadd.f32 %v1388_v34, %v489_v57  ;;  %v490_v2 = vmul.f32 %v453_v0, %v1312_v59  ;;  %1059 = vmatprep.mubr.bf16.mxu0 %v538_v61 }
 0x205   :  { %v515_v3 = vadd.f32 %v1388_v34, %v492_v63  ;;  %1060 = vmatmul.mubr.bf16.gmra.mrb[20].mxu0 %v539_v56  ;;  %v530_v7 = vmax.f32 %v514_v62, 0.0 }
 0x206   :  { %v513_v5 = vadd.f32 %v1388_v34, %v490_v2  ;;  %v528_v9 = vmax.f32 %v512_v1, 0.0 }
 0x207   :  { %v531_v8 = vmax.f32 %v515_v3, 0.0 }
 0x208   :  { %v529_v10 = vmax.f32 %v513_v5, 0.0  ;;  %v1037_v12 = vpop.f32.mrb[12].mxu1 }
 0x209   :  { %v495_v13 = vmul.f32 %v1037_v12, %v1330_v21  ;;  %v466_v14 = vpop.f32.mrb[13].mxu1  ;;  %v541_v16 = vpack.c.bf16 %v531_v8, %v530_v7 }
 0x20a   :  { %v493_v17 = vmul.f32 %v466_v14, %v1322_v11  ;;  %v1038_v18 = vpop.f32.mrb[14].mxu1  ;;  %v540_v19 = vpack.c.bf16 %v529_v10, %v528_v9 }
 0x20b   :  { %v518_v20 = vadd.f32 %v1388_v34, %v495_v13  ;;  %v496_v22 = vmul.f32 %v1038_v18, %v1332_v23  ;;  %v469_v24 = vpop.f32.mrb[15].mxu1 }
 0x20c   :  { %v516_v25 = vadd.f32 %v1388_v34, %v493_v17  ;;  %v494_v26 = vmul.f32 %v469_v24, %v1326_v15  ;;  %1063 = vmatprep.mubr.bf16.mxu0 %v540_v19 }
 0x20d   :  { %v519_v27 = vadd.f32 %v1388_v34, %v496_v22  ;;  %1064 = vmatmul.mubr.bf16.gmra.mrb[24].mxu0 %v541_v16  ;;  %v534_v29 = vmax.f32 %v518_v20, 0.0 }
 0x20e   :  { %v517_v28 = vadd.f32 %v1388_v34, %v494_v26  ;;  %v532_v31 = vmax.f32 %v516_v25, 0.0 }
 0x20f   :  { %v535_v30 = vmax.f32 %v519_v27, 0.0 }
 0x210   :  { %v533_v52 = vmax.f32 %v517_v28, 0.0 }
 0x211   :  { %v543_v53 = vpack.c.bf16 %v535_v30, %v534_v29 }
 0x212   :  { %v542_v54 = vpack.c.bf16 %v533_v52, %v532_v31 }
 0x214   :  { %1067 = vmatprep.mubr.bf16.mxu0 %v542_v54 }
 0x215   :  { %1068 = vmatmul.mubr.bf16.gmra.mrb[28].mxu0 %v543_v53 }
 0x2d0   :  { %v1057_v55 = vpop.f32.mrb[16].mxu0 }
 0x2d1   :  { %v642_v56 = vpop.f32.mrb[17].mxu0  ;;  %v707_v60 = vmul.f32 %v1057_v55, %v1292_v41 }
 0x2d2   :  { %v1058_v57 = vpop.f32.mrb[18].mxu0  ;;  %v705_v63 = vmul.f32 %v642_v56, %v1290_v40 }
 0x2d3   :  { %v708_v61 = vmul.f32 %v1058_v57, %v1296_v43  ;;  %v645_v62 = vpop.f32.mrb[19].mxu0 }
 0x2d4   :  { %v706_v34 = vmul.f32 %v645_v62, %v1294_v42 }
 0x2d5   :  { %v722_v0 = vpack.c.bf16 %v708_v61, %v707_v60 }
 0x2d6   :  { %v721_v1 = vpack.c.bf16 %v706_v34, %v705_v63 }
 0x2d8   :  { %v1061_v2 = vpop.f32.mrb[20].mxu0  ;;  %1071 = vmatprep.subr.bf16.mxu1 %v721_v1 }
 0x2d9   :  { %v658_v3 = vpop.f32.mrb[21].mxu0  ;;  %1072 = vmatpush3.bf16.msra.mxu1 %v721_v1  ;;  %v711_v7 = vmul.f32 %v1061_v2, %v1302_v47 }
 0x2da   :  { %v1062_v5 = vpop.f32.mrb[22].mxu0  ;;  %1073 = vmatprep.subr.bf16.mxu1 %v722_v0  ;;  %v709_v10 = vmul.f32 %v658_v3, %v1298_v44 }
 0x2db   :  { %v712_v8 = vmul.f32 %v1062_v5, %v1304_v49  ;;  %v661_v9 = vpop.f32.mrb[23].mxu0 }
 0x2dc   :  { %v710_v12 = vmul.f32 %v661_v9, %v1300_v45 }
 0x2dd   :  { %v724_v13 = vpack.c.bf16 %v712_v8, %v711_v7  ;;  %1074 = vmatpush3.bf16.msra.mxu1 %v722_v0 }
 0x2de   :  { %v723_v14 = vpack.c.bf16 %v710_v12, %v709_v10 }
 0x2e0   :  { %v1065_v16 = vpop.f32.mrb[24].mxu0  ;;  %1075 = vmatprep.subr.bf16.mxu1 %v723_v14 }
 0x2e1   :  { %v674_v17 = vpop.f32.mrb[25].mxu0  ;;  %1076 = vmatpush3.bf16.msra.mxu1 %v723_v14  ;;  %v715_v19 = vmul.f32 %v1065_v16, %v1318_v4 }
 0x2e2   :  { %v1066_v18 = vpop.f32.mrb[26].mxu0  ;;  %1077 = vmatprep.subr.bf16.mxu1 %v724_v13  ;;  %v713_v24 = vmul.f32 %v674_v17, %v1310_v58 }
 0x2e3   :  { %v716_v20 = vmul.f32 %v1066_v18, %v1320_v6  ;;  %v677_v22 = vpop.f32.mrb[27].mxu0 }
 0x2e4   :  { %v714_v25 = vmul.f32 %v677_v22, %v1312_v59 }
 0x2e5   :  { %v726_v26 = vpack.c.bf16 %v716_v20, %v715_v19  ;;  %1078 = vmatpush3.bf16.msra.mxu1 %v724_v13 }
 0x2e6   :  { %v725_v27 = vpack.c.bf16 %v714_v25, %v713_v24 }
 0x2e8   :  { %v1069_v28 = vpop.f32.mrb[28].mxu0  ;;  %1079 = vmatprep.subr.bf16.mxu1 %v725_v27 }
 0x2e9   :  { %v690_v29 = vpop.f32.mrb[29].mxu0  ;;  %1080 = vmatpush3.bf16.msra.mxu1 %v725_v27  ;;  %v719_v31 = vmul.f32 %v1069_v28, %v1330_v21 }
 0x2ea   :  { %v1070_v30 = vpop.f32.mrb[30].mxu0  ;;  %1081 = vmatprep.subr.bf16.mxu1 %v726_v26  ;;  %v717_v54 = vmul.f32 %v690_v29, %v1322_v11 }
 0x2eb   :  { %v720_v52 = vmul.f32 %v1070_v30, %v1332_v23  ;;  %v693_v53 = vpop.f32.mrb[31].mxu0 }
 0x2ec   :  { %v718_v55 = vmul.f32 %v693_v53, %v1326_v15 }
 0x2ed   :  { %v728_v56 = vpack.c.bf16 %v720_v52, %v719_v31  ;;  %1082 = vmatpush3.bf16.msra.mxu1 %v726_v26 }
 0x2ee   :  { %v727_v57 = vpack.c.bf16 %v718_v55, %v717_v54 }
 0x2f0   :  { %1083 = vmatprep.subr.bf16.mxu1 %v727_v57 }
 0x2f1   :  { %1084 = vmatpush3.bf16.msra.mxu1 %v727_v57 }
 0x2f2   :  { %1085 = vmatprep.subr.bf16.mxu1 %v728_v56 }
 0x2f5   :  { %1086 = vmatpush3.bf16.msra.mxu1 %v728_v56 }
 0x2f8   :  { %1088 = vmatmul.mubr.bf16.vlgmr.msra.gmra.mrb[16].mxu1 %v32_v35  ;;  %v910_v35 = vld [vmem:[%s1525_s6] ss:$0 sm:$0xff] }
 0x2f9   :  { %1091 = vmatprep.mubr.bf16.mxu1 %v33_v36 }
 0x300   :  { %1092 = vmatmul.mubr.bf16.gmra.mrb[20].mxu1 %v34_v38 }
 0x301   :  { %1095 = vmatprep.mubr.bf16.mxu1 %v35_v39 }
 0x308   :  { %1096 = vmatmul.mubr.bf16.gmra.mrb[24].mxu1 %v36_v48 }
 0x309   :  { %1099 = vmatprep.mubr.bf16.mxu1 %v37_v50 }
 0x310   :  { %1100 = vmatmul.mubr.bf16.gmra.mrb[28].mxu1 %v38_v51 }
 0x3cb   :  { %v1089_v33 = vpop.f32.mrb[16].mxu1 }
 0x3cc   :  { %v828_v32 = vmul.f32 %v1089_v33, %v1292_v41  ;;  %v763_v36 = vpop.f32.mrb[17].mxu1 }
 0x3cd   :  { %v826_v38 = vmul.f32 %v763_v36, %v1290_v40  ;;  %v1090_v39 = vpop.f32.mrb[18].mxu1 }
 0x3ce   :  { %v851_v60 = vadd.f32 %v910_v35, %v828_v32  ;;  %v829_v37 = vmul.f32 %v1090_v39, %v1296_v43  ;;  %v766_v48 = vpop.f32.mrb[19].mxu1 }
 0x3cf   :  { %v849_v61 = vadd.f32 %v910_v35, %v826_v38  ;;  %v827_v50 = vmul.f32 %v766_v48, %v1294_v42 }
 0x3d0   :  { %867 = vst [vmem:[%s1526_s7 + $0x10] sm:$0xff] %v851_v60  ;;  %v852_v46 = vadd.f32 %v910_v35, %v829_v37 }
 0x3d1   :  { %865 = vst [vmem:[%s1526_s7] sm:$0xff] %v849_v61  ;;  %v850_v41 = vadd.f32 %v910_v35, %v827_v50 }
 0x3d2   :  { %868 = vst [vmem:[%s1526_s7 + $0x18] sm:$0xff] %v852_v46 }
 0x3d3   :  { %866 = vst [vmem:[%s1526_s7 + $0x8] sm:$0xff] %v850_v41  ;;  %v1093_v40 = vpop.f32.mrb[20].mxu1 }
 0x3d4   :  { %v832_v42 = vmul.f32 %v1093_v40, %v1302_v47  ;;  %v779_v43 = vpop.f32.mrb[21].mxu1 }
 0x3d5   :  { %v830_v51 = vmul.f32 %v779_v43, %v1298_v44  ;;  %v1094_v62 = vpop.f32.mrb[22].mxu1 }
 0x3d6   :  { %v855_v63 = vadd.f32 %v910_v35, %v832_v42  ;;  %v833_v34 = vmul.f32 %v1094_v62, %v1304_v49  ;;  %v782_v0 = vpop.f32.mrb[23].mxu1 }
 0x3d7   :  { %v853_v1 = vadd.f32 %v910_v35, %v830_v51  ;;  %v831_v2 = vmul.f32 %v782_v0, %v1300_v45 }
 0x3d8   :  { %871 = vst [vmem:[%s1526_s7 + $0x30] sm:$0xff] %v855_v63  ;;  %v856_v3 = vadd.f32 %v910_v35, %v833_v34 }
 0x3d9   :  { %869 = vst [vmem:[%s1526_s7 + $0x20] sm:$0xff] %v853_v1  ;;  %v854_v47 = vadd.f32 %v910_v35, %v831_v2 }
 0x3da   :  { %872 = vst [vmem:[%s1526_s7 + $0x38] sm:$0xff] %v856_v3 }
 0x3db   :  { %870 = vst [vmem:[%s1526_s7 + $0x28] sm:$0xff] %v854_v47  ;;  %v1097_v44 = vpop.f32.mrb[24].mxu1 }
 0x3dc   :  { %v836_v45 = vmul.f32 %v1097_v44, %v1318_v4  ;;  %v795_v49 = vpop.f32.mrb[25].mxu1 }
 0x3dd   :  { %v834_v5 = vmul.f32 %v795_v49, %v1310_v58  ;;  %v1098_v7 = vpop.f32.mrb[26].mxu1 }
 0x3de   :  { %v859_v8 = vadd.f32 %v910_v35, %v836_v45  ;;  %v837_v9 = vmul.f32 %v1098_v7, %v1320_v6  ;;  %v798_v10 = vpop.f32.mrb[27].mxu1 }
 0x3df   :  { %v857_v12 = vadd.f32 %v910_v35, %v834_v5  ;;  %v835_v13 = vmul.f32 %v798_v10, %v1312_v59 }
 0x3e0   :  { %875 = vst [vmem:[%s1526_s7 + $0x50] sm:$0xff] %v859_v8  ;;  %v860_v14 = vadd.f32 %v910_v35, %v837_v9 }
 0x3e1   :  { %873 = vst [vmem:[%s1526_s7 + $0x40] sm:$0xff] %v857_v12  ;;  %v858_v4 = vadd.f32 %v910_v35, %v835_v13 }
 0x3e2   :  { %876 = vst [vmem:[%s1526_s7 + $0x58] sm:$0xff] %v860_v14 }
 0x3e3   :  { %874 = vst [vmem:[%s1526_s7 + $0x48] sm:$0xff] %v858_v4  ;;  %v1101_v58 = vpop.f32.mrb[28].mxu1 }
 0x3e4   :  { %v840_v59 = vmul.f32 %v1101_v58, %v1330_v21  ;;  %v811_v6 = vpop.f32.mrb[29].mxu1 }
 0x3e5   :  { %v838_v16 = vmul.f32 %v811_v6, %v1322_v11  ;;  %v1102_v17 = vpop.f32.mrb[30].mxu1 }
 0x3e6   :  { %v863_v18 = vadd.f32 %v910_v35, %v840_v59  ;;  %v841_v19 = vmul.f32 %v1102_v17, %v1332_v23  ;;  %v814_v20 = vpop.f32.mrb[31].mxu1 }
 0x3e7   :  { %v861_v22 = vadd.f32 %v910_v35, %v838_v16  ;;  %v839_v24 = vmul.f32 %v814_v20, %v1326_v15 }
 0x3e8   :  { %879 = vst [vmem:[%s1526_s7 + $0x70] sm:$0xff] %v863_v18  ;;  %v864_v25 = vadd.f32 %v910_v35, %v841_v19 }
 0x3e9   :  { %877 = vst [vmem:[%s1526_s7 + $0x60] sm:$0xff] %v861_v22  ;;  %v862_v21 = vadd.f32 %v910_v35, %v839_v24 }
 0x3ea   :  { %880 = vst [vmem:[%s1526_s7 + $0x78] sm:$0xff] %v864_v25 }
 0x3eb   :  { %878 = vst [vmem:[%s1526_s7 + $0x68] sm:$0xff] %v862_v21 }

</bundles_post_ra>
